<compile_context>
chip_gen: v6e
topology: v6e:2x2x1
jax: 0.10.0
libtpu: 0.0.40
codegen_flags: <defaults>
</compile_context>

<pallas_src>
import jax
import jax.numpy as jnp
from jax.experimental import pallas as pl
from jax.experimental.pallas import tpu as pltpu

BN_EPS = 1e-5


def _round_up(n, m):
    return ((n + m - 1) // m) * m


def _meta_subnet_kernel(x_ref, w1_ref, b1_ref, w2_ref, b2_ref, o_ref):
    # Linear 1 + ReLU: bf16 MXU matmul with f32 accumulation, f32 VPU epilogue.
    x = x_ref[...].astype(jnp.bfloat16)                               # (TB, in_p)
    h = jnp.dot(x, w1_ref[...], preferred_element_type=jnp.float32)   # (TB, hid_p)
    h = jnp.maximum(h + b1_ref[...], 0.0)
    # Linear 2 (BatchNorm folded into W2/b2) + ReLU.
    y = jnp.dot(h.astype(jnp.bfloat16), w2_ref[...],
                preferred_element_type=jnp.float32)                   # (TB, out_p)
    o_ref[...] = jnp.maximum(y + b2_ref[...], 0.0)


def _vmem_estimate(tb, in_p, hid_p, out_p):
    # double-buffered f32 x/out tiles + double-buffered bf16 weights + biases
    # + in-kernel f32 hidden activation.
    return (2 * tb * (in_p + out_p) * 4
            + 2 * (in_p * hid_p + hid_p * out_p) * 2
            + 2 * (hid_p + out_p) * 4
            + tb * hid_p * 4)


def _choose_block_batch(batch, in_p, hid_p, out_p, budget=24 << 20):
    # Largest multiple-of-8 batch tile (<=1024) whose working set fits a budget
    # that is safe on every generation (v7x has only 64 MiB VMEM).
    tb = min(_round_up(batch, 8), 1024)
    while tb > 8 and _vmem_estimate(tb, in_p, hid_p, out_p) > budget:
        tb = _round_up(tb // 2, 8)
    return tb


def meta_subnet_forward(x, params, block_batch=None):
    """x: (batch, in_size) f32  ->  (batch, out_size) f32 (eval-mode MetaSubNet)."""
    w1, b1, w2, b2, gamma, beta, rmean, rvar = params
    batch, in_size = x.shape
    hidden = w1.shape[1]
    out_size = w2.shape[1]

    # Fold eval-mode BatchNorm1d into the second Linear.
    scale = gamma / jnp.sqrt(rvar + BN_EPS)            # (1, out)
    w2f = w2 * scale                                   # (hidden, out)
    b2f = (b2 - rmean) * scale + beta                  # (1, out)

    # Pad feature dims to 128 lanes (lane-dense MXU tiles, unmasked stores).
    in_p = _round_up(in_size, 128)
    hid_p = _round_up(hidden, 128)
    out_p = _round_up(out_size, 128)

    tb = block_batch if block_batch is not None else _choose_block_batch(
        batch, in_p, hid_p, out_p)
    b_pad = _round_up(batch, tb)

    x_p = jnp.zeros((b_pad, in_p), jnp.float32).at[:batch, :in_size].set(x)
    w1_p = jnp.zeros((in_p, hid_p), jnp.bfloat16).at[:in_size, :hidden].set(
        w1.astype(jnp.bfloat16))
    b1_p = jnp.zeros((1, hid_p), jnp.float32).at[:, :hidden].set(b1)
    w2_p = jnp.zeros((hid_p, out_p), jnp.bfloat16).at[:hidden, :out_size].set(
        w2f.astype(jnp.bfloat16))
    b2_p = jnp.zeros((1, out_p), jnp.float32).at[:, :out_size].set(b2f)

    vmem_limit = int(min(max(2 * _vmem_estimate(tb, in_p, hid_p, out_p), 16 << 20),
                         48 << 20))

    y_pad = pl.pallas_call(
        _meta_subnet_kernel,
        out_shape=jax.ShapeDtypeStruct((b_pad, out_p), jnp.float32),
        grid=(b_pad // tb,),
        in_specs=[
            pl.BlockSpec((tb, in_p), lambda i: (i, 0)),      # x: batch-tiled
            pl.BlockSpec((in_p, hid_p), lambda i: (0, 0)),   # W1: resident
            pl.BlockSpec((1, hid_p), lambda i: (0, 0)),      # b1
            pl.BlockSpec((hid_p, out_p), lambda i: (0, 0)),  # W2 (BN folded)
            pl.BlockSpec((1, out_p), lambda i: (0, 0)),      # b2 (BN folded)
        ],
        out_specs=pl.BlockSpec((tb, out_p), lambda i: (i, 0)),
        compiler_params=pltpu.CompilerParams(
            dimension_semantics=("parallel",),
            vmem_limit_bytes=vmem_limit),
    )(x_p, w1_p, b1_p, w2_p, b2_p)

    return y_pad[:batch, :out_size]


def init_params(key, in_size, hidden_size, out_size):
    """Deterministic synthetic parameters (PyTorch-Linear-like uniform init)."""
    k1, k2, k3, k4 = jax.random.split(key, 4)
    lim1 = 1.0 / jnp.sqrt(in_size)
    lim2 = 1.0 / jnp.sqrt(hidden_size)
    # Stored pre-transposed relative to torch.nn.Linear.weight.
    w1 = jax.random.uniform(k1, (in_size, hidden_size), jnp.float32, -lim1, lim1)
    b1 = jax.random.uniform(k2, (1, hidden_size), jnp.float32, -lim1, lim1)
    w2 = jax.random.uniform(k3, (hidden_size, out_size), jnp.float32, -lim2, lim2)
    b2 = jax.random.uniform(k4, (1, out_size), jnp.float32, -lim2, lim2)
    # BatchNorm1d defaults: weight=1, bias=0, running_mean=0, running_var=1.
    gamma = jnp.ones((1, out_size), jnp.float32)
    beta = jnp.zeros((1, out_size), jnp.float32)
    rmean = jnp.zeros((1, out_size), jnp.float32)
    rvar = jnp.ones((1, out_size), jnp.float32)
    return (w1, b1, w2, b2, gamma, beta, rmean, rvar)


def _reference_f32(x, params):
    """Pure f32 module semantics (Linear->ReLU->Linear->BN(eval)->ReLU)."""
    w1, b1, w2, b2, gamma, beta, rmean, rvar = params
    h = jnp.maximum(x @ w1 + b1, 0.0)
    y = h @ w2 + b2
    y = (y - rmean) * gamma / jnp.sqrt(rvar + BN_EPS) + beta
    return jnp.maximum(y, 0.0)


def _reference_bf16(x, params):
    """Reference with the same bf16 matmul inputs / BN fold as the kernel."""
    w1, b1, w2, b2, gamma, beta, rmean, rvar = params
    scale = gamma / jnp.sqrt(rvar + BN_EPS)
    w2f = (w2 * scale).astype(jnp.bfloat16)
    b2f = (b2 - rmean) * scale + beta
    h = jnp.dot(x.astype(jnp.bfloat16), w1.astype(jnp.bfloat16),
                preferred_element_type=jnp.float32)
    h = jnp.maximum(h + b1, 0.0)
    y = jnp.dot(h.astype(jnp.bfloat16), w2f, preferred_element_type=jnp.float32)
    return jnp.maximum(y + b2f, 0.0)


if __name__ == "__main__":
    batch, in_size, hidden_size, out_size = 2, 16, 32, 8

    key = jax.random.PRNGKey(0)
    kx, kp = jax.random.split(key)
    x = jax.random.normal(kx, (batch, in_size), jnp.float32)
    params = init_params(kp, in_size, hidden_size, out_size)

    out = jax.block_until_ready(meta_subnet_forward(x, params))

    assert out.shape == (batch, out_size)
    # Tight check vs a reference using identical bf16 matmul numerics.
    assert jnp.allclose(out, _reference_bf16(x, params), atol=2e-2, rtol=2e-2), \
        "mismatch vs bf16-matched reference"
    # Loose sanity check vs the exact f32 module semantics (bf16 rounding noise).
    assert jnp.allclose(out, _reference_f32(x, params), atol=1e-1, rtol=1e-1), \
        "mismatch vs f32 reference"

    print("KERNEL_OK")
</pallas_src>

<mosaic_0001>
module attributes {stable_mosaic.version = 11 : i64} {
  func.func @_meta_subnet_kernel(%arg0: i32, %arg1: memref<8x128xf32, #tpu.memory_space<vmem>>, %arg2: memref<128x128xbf16, #tpu.memory_space<vmem>>, %arg3: memref<1x128xf32, #tpu.memory_space<vmem>>, %arg4: memref<128x128xbf16, #tpu.memory_space<vmem>>, %arg5: memref<1x128xf32, #tpu.memory_space<vmem>>, %arg6: memref<8x128xf32, #tpu.memory_space<vmem>>) attributes {dimension_semantics = [#tpu.dimension_semantics<parallel>], iteration_bounds = array<i64: 1>, scalar_prefetch = 0 : i64, scratch_operands = 0 : i64, tpu.core_type = #tpu.core_type<tc>, window_params = [{transform_indices = @transform_0, window_bounds = array<i64: 8, 128>}, {pipeline_mode = #tpu.pipeline_mode<synchronous>, transform_indices = @transform_1, window_bounds = array<i64: 128, 128>}, {pipeline_mode = #tpu.pipeline_mode<synchronous>, transform_indices = @transform_2, window_bounds = array<i64: 1, 128>}, {pipeline_mode = #tpu.pipeline_mode<synchronous>, transform_indices = @transform_3, window_bounds = array<i64: 128, 128>}, {pipeline_mode = #tpu.pipeline_mode<synchronous>, transform_indices = @transform_4, window_bounds = array<i64: 1, 128>}, {transform_indices = @transform_5, window_bounds = array<i64: 8, 128>}]} {
    %c0 = arith.constant 0 : index
    %c0_0 = arith.constant 0 : index
    %0 = vector.load %arg1[%c0, %c0_0] : memref<8x128xf32, #tpu.memory_space<vmem>>, vector<8x128xf32>
    %1 = arith.truncf %0 : vector<8x128xf32> to vector<8x128xbf16>
    %c0_1 = arith.constant 0 : index
    %c0_2 = arith.constant 0 : index
    %2 = vector.load %arg2[%c0_1, %c0_2] : memref<128x128xbf16, #tpu.memory_space<vmem>>, vector<128x128xbf16>
    %cst = arith.constant dense<0.000000e+00> : vector<8x128xf32>
    %3 = tpu.matmul %1, %2, %cst {dimension_numbers = #tpu.dot_dimension_numbers<[1], [0], [0], [1], [0, 0, 1, 1], [], []>} : vector<8x128xbf16>, vector<128x128xbf16>, vector<8x128xf32> -> vector<8x128xf32>
    %c0_3 = arith.constant 0 : index
    %c0_4 = arith.constant 0 : index
    %4 = vector.load %arg3[%c0_3, %c0_4] : memref<1x128xf32, #tpu.memory_space<vmem>>, vector<1x128xf32>
    %5 = vector.broadcast %4 : vector<1x128xf32> to vector<8x128xf32>
    %6 = arith.addf %3, %5 : vector<8x128xf32>
    %cst_5 = arith.constant 0.000000e+00 : f32
    %7 = vector.broadcast %cst_5 : f32 to vector<8x128xf32>
    %8 = arith.maximumf %6, %7 : vector<8x128xf32>
    %9 = arith.truncf %8 : vector<8x128xf32> to vector<8x128xbf16>
    %c0_6 = arith.constant 0 : index
    %c0_7 = arith.constant 0 : index
    %10 = vector.load %arg4[%c0_6, %c0_7] : memref<128x128xbf16, #tpu.memory_space<vmem>>, vector<128x128xbf16>
    %cst_8 = arith.constant dense<0.000000e+00> : vector<8x128xf32>
    %11 = tpu.matmul %9, %10, %cst_8 {dimension_numbers = #tpu.dot_dimension_numbers<[1], [0], [0], [1], [0, 0, 1, 1], [], []>} : vector<8x128xbf16>, vector<128x128xbf16>, vector<8x128xf32> -> vector<8x128xf32>
    %c0_9 = arith.constant 0 : index
    %c0_10 = arith.constant 0 : index
    %12 = vector.load %arg5[%c0_9, %c0_10] : memref<1x128xf32, #tpu.memory_space<vmem>>, vector<1x128xf32>
    %13 = vector.broadcast %12 : vector<1x128xf32> to vector<8x128xf32>
    %14 = arith.addf %11, %13 : vector<8x128xf32>
    %cst_11 = arith.constant 0.000000e+00 : f32
    %15 = vector.broadcast %cst_11 : f32 to vector<8x128xf32>
    %16 = arith.maximumf %14, %15 : vector<8x128xf32>
    %c0_12 = arith.constant 0 : index
    %c0_13 = arith.constant 0 : index
    %17 = vector.load %arg6[%c0_12, %c0_13] : memref<8x128xf32, #tpu.memory_space<vmem>>, vector<8x128xf32>
    tpu.vector_store %arg6[%c0_12, %c0_13], %16 {strides = array<i32>} : memref<8x128xf32, #tpu.memory_space<vmem>>, vector<8x128xf32>,
    return
  }
  func.func @transform_0(%arg0: i32) -> (i32, i32) {
    %c0_i32 = arith.constant 0 : i32
    %c0_i32_0 = arith.constant 0 : i32
    return %arg0, %c0_i32 : i32, i32
  }
  func.func @transform_1(%arg0: i32) -> (i32, i32) {
    %c0_i32 = arith.constant 0 : i32
    %c0_i32_0 = arith.constant 0 : i32
    %c0_i32_1 = arith.constant 0 : i32
    return %c0_i32, %c0_i32_0 : i32, i32
  }
  func.func @transform_2(%arg0: i32) -> (i32, i32) {
    %c0_i32 = arith.constant 0 : i32
    %c0_i32_0 = arith.constant 0 : i32
    %c0_i32_1 = arith.constant 0 : i32
    return %c0_i32, %c0_i32_0 : i32, i32
  }
  func.func @transform_3(%arg0: i32) -> (i32, i32) {
    %c0_i32 = arith.constant 0 : i32
    %c0_i32_0 = arith.constant 0 : i32
    %c0_i32_1 = arith.constant 0 : i32
    return %c0_i32, %c0_i32_0 : i32, i32
  }
  func.func @transform_4(%arg0: i32) -> (i32, i32) {
    %c0_i32 = arith.constant 0 : i32
    %c0_i32_0 = arith.constant 0 : i32
    %c0_i32_1 = arith.constant 0 : i32
    return %c0_i32, %c0_i32_0 : i32, i32
  }
  func.func @transform_5(%arg0: i32) -> (i32, i32) {
    %c0_i32 = arith.constant 0 : i32
    %c0_i32_0 = arith.constant 0 : i32
    return %arg0, %c0_i32 : i32, i32
  }
}

</mosaic_0001>

<bundles_post_ra>
// kernel: tpu_custom_call.1
= control target key start
LH: loop header
LB: loop body
LE: loop exit
PB: predicated region body
PF: predicated region fallthrough
CT: control target
= control target key end

     0   :  { %10 = vsyncpa [#allocation3], 0  ;;  %s547_s0 = inlined_call_operand.hbm [shape: f32[8,128], index: 0, kind: input, shape index: {}]   ;;  %s548_s1 = inlined_call_operand.hbm [shape: bf16[128,128], index: 1, kind: input, shape index: {}]   ;;  %s549_s2 = inlined_call_operand.vmem [shape: f32[1,128], index: 2, kind: input, shape index: {}]   ;;  %s550_s3 = inlined_call_operand.hbm [shape: bf16[128,128], index: 3, kind: input, shape index: {}]   ;;  %s551_s4 = inlined_call_operand.vmem [shape: f32[1,128], index: 4, kind: input, shape index: {}]   ;;  %s552_s5 = inlined_call_operand.hbm [shape: f32[8,128], index: 5, kind: output, shape index: {}]  }
   0x1   :  { %11 = vsyncpa [#allocation6], 0 }
   0x2   :  { %12 = vsyncpa [#allocation4], 0  ;;  %s491_s18 = smov [#allocation5]  }
   0x3   :  { %s28_s19 = sshll.u32 %s491_s18, 4  ;;  %s29_s19 = int_to_ptr.vmem [resolvable:$true] %s28_s19 }
   0x4   :  { %s413_s20 = scalar_lea.vmem %s29_s19, 1024  ;;  %p418_p1 = scmp.lt.s32.totalorder %s29_s19, %s29_s19 }
   0x5   :  { %p414_p0 = scmp.ne.s32.totalorder %s29_s19, %s413_s20  ;;  %p419_p2 = scmp.lt.s32.totalorder %s413_s20, %s413_s20 }
   0x7   :  { %p420_p3 = por %p419_p2, %p418_p1 }
   0x9   :  { %p421_p4 = pnand %p420_p3, %p414_p0 }
   0xb   :  { %424 = shalt.err (!%p421_p4)
}
   0xc   :  { %s492_s21 = smov 64   ;;  %s493_s22 = smov 4  }
   0xd   :  { %34 = dma.hbm_to_vmem [thread:$0]  %s548_s1, 1024, %s29_s19, [#allocation6], %s492_s21, %s492_s21, %s493_s22  }
   0xe   :  { %s494_s25 = smov [#allocation2]   ;;  %s495_s27 = smov [#allocation7]  }
   0xf   :  { %s19_s26 = sshll.u32 %s494_s25, 4  ;;  %s42_s28 = sshll.u32 %s495_s27, 4  ;;  %s20_s26 = int_to_ptr.vmem [resolvable:$true] %s19_s26  ;;  %s43_s28 = int_to_ptr.vmem [resolvable:$true] %s42_s28 }
  0x10   :  { %s433_s29 = scalar_lea.vmem %s20_s26, 128  ;;  %p438_p6 = scmp.lt.s32.totalorder %s20_s26, %s20_s26 }
  0x11   :  { %p434_p5 = scmp.ne.s32.totalorder %s20_s26, %s433_s29  ;;  %p439_p7 = scmp.lt.s32.totalorder %s433_s29, %s433_s29 }
  0x13   :  { %p440_p8 = por %p439_p7, %p438_p6 }
  0x15   :  { %p441_p9 = pnand %p440_p8, %p434_p5 }
  0x17   :  { %444 = shalt.err (!%p441_p9)
}
  0x18   :  { %22 = dma.hbm_to_vmem [thread:$0]  %s547_s0, 128, %s20_s26, [#allocation3]  }
  0x19   :  { %s453_s7 = scalar_lea.vmem %s43_s28, 1024  ;;  %p458_p11 = scmp.lt.s32.totalorder %s43_s28, %s43_s28 }
  0x1a   :  { %p454_p10 = scmp.ne.s32.totalorder %s43_s28, %s453_s7  ;;  %p459_p12 = scmp.lt.s32.totalorder %s453_s7, %s453_s7 }
  0x1c   :  { %p460_p13 = por %p459_p12, %p458_p11 }
  0x1e   :  { %p461_p0 = pnand %p460_p13, %p454_p10 }
  0x20   :  { %464 = shalt.err (!%p461_p0)
}
  0x21   :  { %48 = dma.hbm_to_vmem [thread:$0]  %s550_s3, 1024, %s43_s28, [#allocation6], %s492_s21, %s492_s21, %s493_s22  }
  0x22   :  { %485 = dma.done.wait [#allocation3], 128  }
  0x23   :  { %486 = vsyncadd [#allocation3], 4294967168 }
  0x24   :  { %487 = dma.done.wait [#allocation6], 2048  }
  0x25   :  { %488 = vsyncadd [#allocation6], 4294965248  ;;  %v496_v0 = vmov 0.0   ;;  %vm497_vm0 = vmmov 0   ;;  %v389_v1 = vld [vmem:[#allocation5 + $0x38] sm:$0xff]   ;;  %v390_v2 = vld [vmem:[#allocation5 + $0x30] sm:$0xff]  }
  0x26   :  { %341 = vmatprep.subr.bf16.mxu0 %v496_v0  ;;  %357 = vmatprep.mubr.msk.bf16.mxu0 %vm497_vm0, %v496_v0  ;;  %v391_v3 = vld [vmem:[#allocation5 + $0x28] sm:$0xff]   ;;  %v397_v4 = vld [vmem:[#allocation7 + $0x38] sm:$0xff]   ;;  %v392_v5 = vld [vmem:[#allocation5 + $0x20] sm:$0xff]   ;;  %s498_s11 = smov [#allocation8]  }
  0x27   :  { %361 = vmatprep.subr.bf16.mxu1 %v496_v0  ;;  %377 = vmatprep.mubr.msk.bf16.mxu1 %vm497_vm0, %v496_v0  ;;  %v398_v6 = vld [vmem:[#allocation7 + $0x30] sm:$0xff]   ;;  %v393_v7 = vld [vmem:[#allocation5 + $0x18] sm:$0xff]   ;;  %v399_v8 = vld [vmem:[#allocation7 + $0x28] sm:$0xff]   ;;  %s295_s12 = sshll.u32 %s498_s11, 4  ;;  %s296_s12 = int_to_ptr.vmem [resolvable:$true] %s295_s12 }
  0x28   :  { %342 = vmatpush3.bf16.msra.mxu0 %v389_v1  ;;  %362 = vmatpush3.bf16.msra.mxu1 %v397_v4  ;;  %v394_v9 = vld [vmem:[#allocation5 + $0x10] sm:$0xff]   ;;  %v400_v10 = vld [vmem:[#allocation7 + $0x20] sm:$0xff]   ;;  %v395_v11 = vld [vmem:[#allocation5 + $0x8] sm:$0xff]   ;;  %p470_p2 = scmp.lt.s32.totalorder %s296_s12, %s296_s12 }
  0x29   :  { %343 = vmatprep.subr.bf16.mxu0 %v496_v0  ;;  %363 = vmatprep.subr.bf16.mxu1 %v496_v0  ;;  %v401_v12 = vld [vmem:[#allocation7 + $0x18] sm:$0xff]   ;;  %v396_v13 = vld [vmem:[#allocation5] sm:$0xff]   ;;  %v402_v15 = vld [vmem:[#allocation7 + $0x10] sm:$0xff]  }
  0x2a   :  { %v61_v14 = vld [vmem:[#allocation2] sm:$0xff]  ;;  %v403_v17 = vld [vmem:[#allocation7 + $0x8] sm:$0xff]   ;;  %v404_v18 = vld [vmem:[#allocation7] sm:$0xff]  }
  0x2b   :  { %v62_v16 = vpack.c.bf16 %v61_v14, %v61_v14  ;;  %v305_v19 = vld [vmem:[%s549_s2] ss:$0 sm:$0xff]  ;;  %s465_s2 = scalar_lea.vmem %s296_s12, 128 }
  0x2c   :  { %344 = vmatpush3.bf16.msra.mxu0 %v390_v2  ;;  %364 = vmatpush3.bf16.msra.mxu1 %v398_v6  ;;  %v314_v27 = vld [vmem:[%s551_s4] ss:$0 sm:$0xff]  ;;  %p466_p1 = scmp.ne.s32.totalorder %s296_s12, %s465_s2  ;;  %p471_p3 = scmp.lt.s32.totalorder %s465_s2, %s465_s2 }
  0x2d   :  { %345 = vmatprep.subr.bf16.mxu0 %v496_v0  ;;  %365 = vmatprep.subr.bf16.mxu1 %v496_v0 }
  0x2e   :  { %p472_p4 = por %p471_p3, %p470_p2 }
  0x30   :  { %346 = vmatpush3.bf16.msra.mxu0 %v391_v3  ;;  %366 = vmatpush3.bf16.msra.mxu1 %v399_v8  ;;  %p473_p5 = pnand %p472_p4, %p466_p1 }
  0x31   :  { %347 = vmatprep.subr.bf16.mxu0 %v496_v0  ;;  %367 = vmatprep.subr.bf16.mxu1 %v496_v0 }
  0x34   :  { %348 = vmatpush3.bf16.msra.mxu0 %v392_v5  ;;  %368 = vmatpush3.bf16.msra.mxu1 %v400_v10 }
  0x35   :  { %349 = vmatprep.subr.bf16.mxu0 %v496_v0  ;;  %369 = vmatprep.subr.bf16.mxu1 %v496_v0 }
  0x38   :  { %350 = vmatpush3.bf16.msra.mxu0 %v393_v7  ;;  %370 = vmatpush3.bf16.msra.mxu1 %v401_v12 }
  0x39   :  { %351 = vmatprep.subr.bf16.mxu0 %v496_v0  ;;  %371 = vmatprep.subr.bf16.mxu1 %v496_v0 }
  0x3c   :  { %352 = vmatpush3.bf16.msra.mxu0 %v394_v9  ;;  %372 = vmatpush3.bf16.msra.mxu1 %v402_v15 }
  0x3d   :  { %353 = vmatprep.subr.bf16.mxu0 %v496_v0  ;;  %373 = vmatprep.subr.bf16.mxu1 %v496_v0 }
  0x40   :  { %354 = vmatpush3.bf16.msra.mxu0 %v395_v11  ;;  %374 = vmatpush3.bf16.msra.mxu1 %v403_v17 }
  0x41   :  { %355 = vmatprep.subr.bf16.mxu0 %v496_v0  ;;  %375 = vmatprep.subr.bf16.mxu1 %v496_v0 }
  0x44   :  { %356 = vmatpush3.bf16.msra.mxu0 %v396_v13  ;;  %376 = vmatpush3.bf16.msra.mxu1 %v404_v18 }
  0x47   :  { %358 = vmatmul.mubr.bf16.vlgmr.msra.gmra.mxu0 %v62_v16 }
 0x107   :  { %v168_v20 = vpop.f32.mrf.mxu0 }
 0x108   :  { %v169_v21 = vadd.f32 %v305_v19, %v168_v20 }
 0x109   :  { %v359_v22 = vpop.f32.mrf.mxu0 }
 0x10a   :  { %v174_v23 = vmax.f32 %v169_v21, 0.0 }
 0x10b   :  { %v171_v24 = vpop.f32.mrf.mxu0 }
 0x10c   :  { %v175_v25 = vpack.c.bf16 %v174_v23, %v174_v23 }
 0x10d   :  { %v360_v26 = vpop.f32.mrf.mxu0 }
 0x10e   :  { %378 = vmatmul.mubr.bf16.vlgmr.msra.gmra.mxu1 %v175_v25 }
 0x1ce   :  { %v281_v28 = vpop.f32.mrf.mxu1 }
 0x1cf   :  { %v282_v29 = vadd.f32 %v314_v27, %v281_v28 }
 0x1d0   :  { %v379_v30 = vpop.f32.mrf.mxu1 }
 0x1d1   :  { %v287_v31 = vmax.f32 %v282_v29, 0.0 }
 0x1d2   :  { %v284_v32 = vpop.f32.mrf.mxu1 }
 0x1d3   :  { %288 = vst [vmem:[#allocation8] sm:$0xff] %v287_v31 }
 0x1d4   :  { %v380_v33 = vpop.f32.mrf.mxu1 }
 0x1d5   :  { %476 = shalt.err (!%p473_p5)
}
 0x1d6   :  { %298 = dma.vmem_to_hbm [thread:$0]  %s296_s12, 128, %s552_s5, [#allocation4]  }
 0x1d7   :  { %489 = dma.done.wait [#allocation4], 128  }
 0x1d8   :  { %490 = vsyncadd [#allocation4], 4294967168 }
 0x1d9   :  { %302 = vsyncpa [#allocation3], 1 }
 0x1da   :  { %303 = vsyncpa [#allocation6], 1 }
 0x1db   :  { %304 = vsyncpa [#allocation4], 1 }

</bundles_post_ra>
